<compile_context>
chip_gen: v7x
topology: tpu7x:2x2x1
jax: 0.10.0
libtpu: 0.0.40
codegen_flags: <defaults>
</compile_context>

<pallas_src>
import functools

import jax
import jax.numpy as jnp
from jax import lax
from jax.experimental import pallas as pl
from jax.experimental.pallas import tpu as pltpu


def _round_up(n, m):
    return ((n + m - 1) // m) * m


def fraudnet_kernel(x_ref, w1_ref, b1_ref, w2_ref, b2_ref, w3_ref, b3_ref, o_ref):
    # x arrives in its native (tb, F) layout straight from HBM.  Cast to the
    # compute dtype in-kernel (free VPU work for a mem-bound kernel).
    x = x_ref[...].astype(w1_ref.dtype)                          # (tb, F)

    # Layer 1: contract w1 (64, F) with x (tb, F) over F -> (64, tb).
    # Batch lands on the 128-wide lane dimension; no HBM-side transpose.
    h1 = lax.dot_general(
        w1_ref[...], x,
        dimension_numbers=(((1,), (1,)), ((), ())),
        preferred_element_type=jnp.float32)
    h1 = jnp.maximum(h1 + b1_ref[...], 0.0)                      # f32 epilogue (VPU)
    h1 = h1.astype(w2_ref.dtype)

    # Layer 2: (32, 64) @ (64, tb) -> (32, tb)
    h2 = jnp.dot(w2_ref[...], h1, preferred_element_type=jnp.float32)
    h2 = jnp.maximum(h2 + b2_ref[...], 0.0)
    h2 = h2.astype(w3_ref.dtype)

    # Layer 3: (1, 32) @ (32, tb) -> (1, tb), lane-dense unmasked store.
    logits = jnp.dot(w3_ref[...], h2, preferred_element_type=jnp.float32)
    logits = logits + b3_ref[...]
    o_ref[...] = jax.nn.sigmoid(logits).astype(o_ref.dtype)


@functools.partial(jax.jit, static_argnames=("compute_dtype", "tb", "vmem_limit_bytes"))
def fraudnet_forward(x, params, *, compute_dtype=jnp.bfloat16, tb=16384,
                     vmem_limit_bytes=None):
    """x: (B, F) float32.  params in PyTorch layout: w* (out, in), b* (out,)."""
    B, F = x.shape
    cd = jnp.dtype(compute_dtype)

    # tb=16384 keeps per-step x streaming (~1 MiB) well above the ~0.35 us
    # grid-step overhead while the double-buffered x tile + f32 intermediates
    # fit under even v5e's 16 MiB default scoped VMEM (v6e/v7x: 32 MiB).
    # Sweep up to 32768 together with vmem_limit_bytes if desired.  The min()
    # only triggers when B < tb (tiny inputs); it never shrinks the tile at
    # the large batch sizes this default targets.
    tb = int(min(tb, _round_up(B, 128)))
    n_tiles = pl.cdiv(B, tb)
    Bp = n_tiles * tb             # output padded to whole tiles -> unmasked vst

    # Only the tiny resident weights are pre-cast; x streams as-is (f32) and
    # is cast in-kernel, so the pallas_call is the only HBM traffic on x.
    w1 = params["w1"].astype(cd)                       # (64, F)
    w2 = params["w2"].astype(cd)                       # (32, 64)
    w3 = params["w3"].astype(cd)                       # (1, 32)
    b1 = params["b1"].reshape(64, 1).astype(jnp.float32)
    b2 = params["b2"].reshape(32, 1).astype(jnp.float32)
    b3 = params["b3"].reshape(1, 1).astype(jnp.float32)

    const = lambda i: (0, 0)                           # weights stay resident

    flops = 2 * B * (F * 64 + 64 * 32 + 32 * 1)
    bytes_accessed = (
        x.size * x.dtype.itemsize                      # x read once, in place
        + Bp * cd.itemsize                             # (1, Bp) output
        + sum(a.size * a.dtype.itemsize for a in (w1, w2, w3, b1, b2, b3))
    )

    out = pl.pallas_call(
        fraudnet_kernel,
        out_shape=jax.ShapeDtypeStruct((1, Bp), cd),
        grid=(n_tiles,),
        in_specs=[
            pl.BlockSpec((tb, F), lambda i: (i, 0)),   # native-layout x tile
            pl.BlockSpec((64, F), const),
            pl.BlockSpec((64, 1), const),
            pl.BlockSpec((32, 64), const),
            pl.BlockSpec((32, 1), const),
            pl.BlockSpec((1, 32), const),
            pl.BlockSpec((1, 1), const),
        ],
        out_specs=pl.BlockSpec((1, tb), lambda i: (0, i)),   # lane-dense store
        compiler_params=pltpu.CompilerParams(
            dimension_semantics=("parallel",),         # megacore split on v7x
            vmem_limit_bytes=vmem_limit_bytes,
        ),
        cost_estimate=pl.CostEstimate(
            flops=flops, transcendentals=B, bytes_accessed=bytes_accessed,
        ),
    )(x, w1, b1, w2, b2, w3, b3)

    # Back to the PyTorch-facing (B, 1) f32 shape (padding lanes dropped).
    return out[0, :B].reshape(B, 1).astype(jnp.float32)


def init_params(key, input_size):
    """Deterministic init matching nn.Linear shapes (PyTorch (out, in) layout)."""
    k1, k2, k3, k4, k5, k6 = jax.random.split(key, 6)
    scale = 0.1
    return {
        "w1": scale * jax.random.normal(k1, (64, input_size), jnp.float32),
        "b1": scale * jax.random.normal(k2, (64,), jnp.float32),
        "w2": scale * jax.random.normal(k3, (32, 64), jnp.float32),
        "b2": scale * jax.random.normal(k4, (32,), jnp.float32),
        "w3": scale * jax.random.normal(k5, (1, 32), jnp.float32),
        "b3": scale * jax.random.normal(k6, (1,), jnp.float32),
    }


def reference_forward(x, p):
    """Pure-JAX reference of the PyTorch forward pass (f32)."""
    h1 = jnp.maximum(x @ p["w1"].T + p["b1"], 0.0)
    h2 = jnp.maximum(h1 @ p["w2"].T + p["b2"], 0.0)
    return jax.nn.sigmoid(h2 @ p["w3"].T + p["b3"])


if __name__ == "__main__":
    INPUT_SIZE = 16

    key = jax.random.PRNGKey(0)
    k_params, k_x1, k_x2 = jax.random.split(key, 3)
    params = init_params(k_params, INPUT_SIZE)

    # Test 1/2: batch aligned to the lane width (single full tile).
    x = jax.random.normal(k_x1, (256, INPUT_SIZE), jnp.float32)
    ref = reference_forward(x, params)

    out_f32 = jax.block_until_ready(
        fraudnet_forward(x, params, compute_dtype=jnp.float32))
    assert out_f32.shape == (256, 1), out_f32.shape
    assert jnp.allclose(out_f32, ref, atol=1e-5, rtol=1e-5), "f32 mismatch vs reference"

    out_bf16 = jax.block_until_ready(
        fraudnet_forward(x, params, compute_dtype=jnp.bfloat16))
    assert out_bf16.shape == (256, 1), out_bf16.shape
    assert jnp.allclose(out_bf16, ref, atol=2e-2, rtol=2e-2), "bf16 mismatch vs reference"

    # Test 3: ragged batch (multi-tile grid with a partial tail block, no
    # host-side padding of x) -- the OOB tail columns are computed and dropped.
    x3 = jax.random.normal(k_x2, (300, INPUT_SIZE), jnp.float32)
    ref3 = reference_forward(x3, params)
    out3 = jax.block_until_ready(
        fraudnet_forward(x3, params, compute_dtype=jnp.float32, tb=128))
    assert out3.shape == (300, 1), out3.shape
    assert jnp.allclose(out3, ref3, atol=1e-5, rtol=1e-5), "ragged-batch mismatch"

    print("KERNEL_OK")
</pallas_src>

<mosaic_0001>
module attributes {stable_mosaic.version = 11 : i64} {
  func.func @fraudnet_kernel(%arg0: i32, %arg1: memref<256x16xf32, #tpu.memory_space<vmem>>, %arg2: memref<64x16xf32, #tpu.memory_space<vmem>>, %arg3: memref<64x1xf32, #tpu.memory_space<vmem>>, %arg4: memref<32x64xf32, #tpu.memory_space<vmem>>, %arg5: memref<32x1xf32, #tpu.memory_space<vmem>>, %arg6: memref<1x32xf32, #tpu.memory_space<vmem>>, %arg7: memref<1x1xf32, #tpu.memory_space<vmem>>, %arg8: memref<1x256xf32, #tpu.memory_space<vmem>>) attributes {dimension_semantics = [#tpu.dimension_semantics<parallel>], iteration_bounds = array<i64: 1>, scalar_prefetch = 0 : i64, scratch_operands = 0 : i64, tpu.core_type = #tpu.core_type<tc>, window_params = [{transform_indices = @transform_0, window_bounds = array<i64: 256, 16>}, {pipeline_mode = #tpu.pipeline_mode<synchronous>, transform_indices = @transform_1, window_bounds = array<i64: 64, 16>}, {pipeline_mode = #tpu.pipeline_mode<synchronous>, transform_indices = @transform_2, window_bounds = array<i64: 64, 1>}, {pipeline_mode = #tpu.pipeline_mode<synchronous>, transform_indices = @transform_3, window_bounds = array<i64: 32, 64>}, {pipeline_mode = #tpu.pipeline_mode<synchronous>, transform_indices = @transform_4, window_bounds = array<i64: 32, 1>}, {pipeline_mode = #tpu.pipeline_mode<synchronous>, transform_indices = @transform_5, window_bounds = array<i64: 1, 32>}, {pipeline_mode = #tpu.pipeline_mode<synchronous>, transform_indices = @transform_6, window_bounds = array<i64: 1, 1>}, {transform_indices = @transform_7, window_bounds = array<i64: 1, 256>}]} {
    %c0 = arith.constant 0 : index
    %c0_0 = arith.constant 0 : index
    %0 = vector.load %arg1[%c0, %c0_0] : memref<256x16xf32, #tpu.memory_space<vmem>>, vector<256x16xf32>
    %c0_1 = arith.constant 0 : index
    %c0_2 = arith.constant 0 : index
    %1 = vector.load %arg2[%c0_1, %c0_2] : memref<64x16xf32, #tpu.memory_space<vmem>>, vector<64x16xf32>
    %cst = arith.constant dense<0.000000e+00> : vector<64x256xf32>
    %2 = tpu.matmul %1, %0, %cst {dimension_numbers = #tpu.dot_dimension_numbers<[1], [1], [0], [0], [0, 0, 1, 0], [], []>} : vector<64x16xf32>, vector<256x16xf32>, vector<64x256xf32> -> vector<64x256xf32>
    %c0_3 = arith.constant 0 : index
    %c0_4 = arith.constant 0 : index
    %3 = vector.load %arg3[%c0_3, %c0_4] : memref<64x1xf32, #tpu.memory_space<vmem>>, vector<64x1xf32>
    %4 = vector.broadcast %3 : vector<64x1xf32> to vector<64x256xf32>
    %5 = arith.addf %2, %4 : vector<64x256xf32>
    %cst_5 = arith.constant 0.000000e+00 : f32
    %6 = vector.broadcast %cst_5 : f32 to vector<64x256xf32>
    %7 = arith.maximumf %5, %6 : vector<64x256xf32>
    %c0_6 = arith.constant 0 : index
    %c0_7 = arith.constant 0 : index
    %8 = vector.load %arg4[%c0_6, %c0_7] : memref<32x64xf32, #tpu.memory_space<vmem>>, vector<32x64xf32>
    %cst_8 = arith.constant dense<0.000000e+00> : vector<32x256xf32>
    %9 = tpu.matmul %8, %7, %cst_8 {dimension_numbers = #tpu.dot_dimension_numbers<[1], [0], [0], [1], [0, 0, 1, 1], [], []>} : vector<32x64xf32>, vector<64x256xf32>, vector<32x256xf32> -> vector<32x256xf32>
    %c0_9 = arith.constant 0 : index
    %c0_10 = arith.constant 0 : index
    %10 = vector.load %arg5[%c0_9, %c0_10] : memref<32x1xf32, #tpu.memory_space<vmem>>, vector<32x1xf32>
    %11 = vector.broadcast %10 : vector<32x1xf32> to vector<32x256xf32>
    %12 = arith.addf %9, %11 : vector<32x256xf32>
    %cst_11 = arith.constant 0.000000e+00 : f32
    %13 = vector.broadcast %cst_11 : f32 to vector<32x256xf32>
    %14 = arith.maximumf %12, %13 : vector<32x256xf32>
    %c0_12 = arith.constant 0 : index
    %c0_13 = arith.constant 0 : index
    %15 = vector.load %arg6[%c0_12, %c0_13] : memref<1x32xf32, #tpu.memory_space<vmem>>, vector<1x32xf32>
    %cst_14 = arith.constant dense<0.000000e+00> : vector<1x256xf32>
    %16 = tpu.matmul %15, %14, %cst_14 {dimension_numbers = #tpu.dot_dimension_numbers<[1], [0], [0], [1], [0, 0, 1, 1], [], []>} : vector<1x32xf32>, vector<32x256xf32>, vector<1x256xf32> -> vector<1x256xf32>
    %c0_15 = arith.constant 0 : index
    %c0_16 = arith.constant 0 : index
    %17 = vector.load %arg7[%c0_15, %c0_16] : memref<1x1xf32, #tpu.memory_space<vmem>>, vector<1x1xf32>
    %18 = vector.broadcast %17 : vector<1x1xf32> to vector<1x256xf32>
    %19 = arith.addf %16, %18 : vector<1x256xf32>
    %20 = arith.negf %19 : vector<1x256xf32>
    %21 = math.exp %20 : vector<1x256xf32>
    %cst_17 = arith.constant 1.000000e+00 : f32
    %22 = vector.broadcast %cst_17 : f32 to vector<1x256xf32>
    %23 = arith.addf %22, %21 : vector<1x256xf32>
    %24 = arith.divf %22, %23 : vector<1x256xf32>
    %c0_18 = arith.constant 0 : index
    %c0_19 = arith.constant 0 : index
    %25 = vector.load %arg8[%c0_18, %c0_19] : memref<1x256xf32, #tpu.memory_space<vmem>>, vector<1x256xf32>
    tpu.vector_store %arg8[%c0_18, %c0_19], %24 {strides = array<i32>} : memref<1x256xf32, #tpu.memory_space<vmem>>, vector<1x256xf32>,
    return
  }
  func.func @transform_0(%arg0: i32) -> (i32, i32) {
    %c0_i32 = arith.constant 0 : i32
    %c0_i32_0 = arith.constant 0 : i32
    return %arg0, %c0_i32 : i32, i32
  }
  func.func @transform_1(%arg0: i32) -> (i32, i32) {
    %c0_i32 = arith.constant 0 : i32
    %c0_i32_0 = arith.constant 0 : i32
    %c0_i32_1 = arith.constant 0 : i32
    return %c0_i32, %c0_i32_0 : i32, i32
  }
  func.func @transform_2(%arg0: i32) -> (i32, i32) {
    %c0_i32 = arith.constant 0 : i32
    %c0_i32_0 = arith.constant 0 : i32
    %c0_i32_1 = arith.constant 0 : i32
    return %c0_i32, %c0_i32_0 : i32, i32
  }
  func.func @transform_3(%arg0: i32) -> (i32, i32) {
    %c0_i32 = arith.constant 0 : i32
    %c0_i32_0 = arith.constant 0 : i32
    %c0_i32_1 = arith.constant 0 : i32
    return %c0_i32, %c0_i32_0 : i32, i32
  }
  func.func @transform_4(%arg0: i32) -> (i32, i32) {
    %c0_i32 = arith.constant 0 : i32
    %c0_i32_0 = arith.constant 0 : i32
    %c0_i32_1 = arith.constant 0 : i32
    return %c0_i32, %c0_i32_0 : i32, i32
  }
  func.func @transform_5(%arg0: i32) -> (i32, i32) {
    %c0_i32 = arith.constant 0 : i32
    %c0_i32_0 = arith.constant 0 : i32
    %c0_i32_1 = arith.constant 0 : i32
    return %c0_i32, %c0_i32_0 : i32, i32
  }
  func.func @transform_6(%arg0: i32) -> (i32, i32) {
    %c0_i32 = arith.constant 0 : i32
    %c0_i32_0 = arith.constant 0 : i32
    %c0_i32_1 = arith.constant 0 : i32
    return %c0_i32, %c0_i32_0 : i32, i32
  }
  func.func @transform_7(%arg0: i32) -> (i32, i32) {
    %c0_i32 = arith.constant 0 : i32
    %c0_i32_0 = arith.constant 0 : i32
    return %c0_i32, %arg0 : i32, i32
  }
}

</mosaic_0001>

<bundles_post_ra>
// kernel: fraudnet_forward.1
= control target key start
LH: loop header
LB: loop body
LE: loop exit
PB: predicated region body
PF: predicated region fallthrough
CT: control target
= control target key end

     0   :  { %s1138_s0 = inlined_call_operand.vmem [shape: f32[256,16], index: 0, kind: input, shape index: {}]   ;;  %s1139_s1 = inlined_call_operand.vmem [shape: f32[64,16], index: 1, kind: input, shape index: {}]   ;;  %s1140_s2 = inlined_call_operand.vmem [shape: f32[64,1], index: 2, kind: input, shape index: {}]   ;;  %s1141_s3 = inlined_call_operand.vmem [shape: f32[32,64], index: 3, kind: input, shape index: {}]   ;;  %s1142_s4 = inlined_call_operand.vmem [shape: f32[32,1], index: 4, kind: input, shape index: {}]   ;;  %s1143_s5 = inlined_call_operand.vmem [shape: f32[1,32], index: 5, kind: input, shape index: {}]   ;;  %s1144_s6 = inlined_call_operand.<no memory space> [shape: f32[1,1], index: 6, kind: input, shape index: {}]   ;;  %s1145_s7 = inlined_call_operand.hbm [shape: f32[1,256], index: 7, kind: output, shape index: {}]  }
   0x1   :  { %v12_v0 = vstv %s1144_s6 }
   0x2   :  { %13 = vst [vmem:[#allocation2] sm:$0x1] %v12_v0 }
   0x3   :  { %v45_v1 = vld [vmem:[%s1138_s0 + $0x80] sm:$0xff]  ;;  %v46_v2 = vld [vmem:[%s1138_s0 + $0x88] sm:$0xff]  ;;  %vm117_vm0 = vcmask 130048   ;;  %v47_v7 = vld [vmem:[%s1138_s0 + $0x90] sm:$0xff]  ;;  %v845_v8 = vmov 0  }
   0x4   :  { %v29_v3 = vld [vmem:[%s1138_s0] sm:$0xff]  ;;  %v735_v4 = vpack.c.bf16 %v46_v2, %v45_v1  ;;  %vm903_vm1 = vmpackc.low %vm117_vm0, %vm117_vm0  ;;  %v30_v6 = vld [vmem:[%s1138_s0 + $0x8] sm:$0xff]  ;;  %811 = vset.pattern.permute.xlu0 %v845_v8  ;;  %812 = vset.pattern.permute.xlu1 %v845_v8 }
   0x5   :  { %v738_v9 = vpack.c.bf16 %v30_v6, %v29_v3  ;;  %v48_v10 = vld [vmem:[%s1138_s0 + $0x98] sm:$0xff]  ;;  %v31_v12 = vld [vmem:[%s1138_s0 + $0x10] sm:$0xff]  ;;  %v49_v14 = vld [vmem:[%s1138_s0 + $0xa0] sm:$0xff] }
   0x6   :  { %737 = vmatprep.subr.msk.bf16.mxu0 %vm903_vm1, %v735_v4  ;;  %v741_v11 = vpack.c.bf16 %v48_v10, %v47_v7  ;;  %v32_v13 = vld [vmem:[%s1138_s0 + $0x18] sm:$0xff]  ;;  %v50_v15 = vld [vmem:[%s1138_s0 + $0xa8] sm:$0xff]  ;;  %v937_v18 = vld [vmem:[%s1139_s1] sm:$0xff] }
   0x7   :  { %740 = vmatpush3.bf16.xpose.msk.msra.mxu0 %vm903_vm1, %v738_v9  ;;  %v744_v16 = vpack.c.bf16 %v32_v13, %v31_v12  ;;  %v747_v17 = vpack.c.bf16 %v50_v15, %v49_v14  ;;  %719 = vmatprep.mubr.msk.f32.mxu0 %vm117_vm0, %v937_v18  ;;  %v33_v19 = vld [vmem:[%s1138_s0 + $0x20] sm:$0xff]  ;;  %v34_v20 = vld [vmem:[%s1138_s0 + $0x28] sm:$0xff]  ;;  %v51_v22 = vld [vmem:[%s1138_s0 + $0xb0] sm:$0xff] }
   0x8   :  { %743 = vmatprep.subr.msk.bf16.mxu0 %vm903_vm1, %v741_v11  ;;  %v69_v21 = vld [vmem:[%s1140_s2] sm:$0xff]  ;;  %v52_v23 = vld [vmem:[%s1138_s0 + $0xb8] sm:$0xff]  ;;  %v71_v24 = vld [vmem:[%s1140_s2 + $0x10] sm:$0xff]  ;;  %v750_v26 = vpack.c.bf16 %v34_v20, %v33_v19 }
   0x9   :  { %79 = vperm.xlu0 %811, %v69_v21   ;;  %v70_v25 = vld [vmem:[%s1140_s2 + $0x8] sm:$0xff]  ;;  %89 = vperm.xlu1 %812, %v71_v24   ;;  %v72_v27 = vld [vmem:[%s1140_s2 + $0x18] sm:$0xff]  ;;  %v753_v28 = vpack.c.bf16 %v52_v23, %v51_v22 }
   0xd   :  { %84 = vperm.xlu0 %811, %v70_v25  }
   0xf   :  { %746 = vmatpush3.bf16.xpose.msk.msra.mxu0 %vm903_vm1, %v744_v16 }
  0x10   :  { %749 = vmatprep.subr.msk.bf16.mxu0 %vm903_vm1, %v747_v17 }
  0x11   :  { %14 = vsyncpa [#allocation4], 0  ;;  %v73_v29 = vld [vmem:[%s1140_s2 + $0x20] sm:$0xff]  ;;  %94 = vperm.xlu1 %812, %v72_v27   ;;  %v74_v30 = vld [vmem:[%s1140_s2 + $0x28] sm:$0xff]  ;;  %v846_v8 = vmov 0.0   ;;  %vm395_vm2 = vcmask 523264  }
  0x12   :  { %v35_v31 = vld [vmem:[%s1138_s0 + $0x30] sm:$0xff]  ;;  %v36_v32 = vld [vmem:[%s1138_s0 + $0x38] sm:$0xff]  ;;  %v53_v33 = vld [vmem:[%s1138_s0 + $0xc0] sm:$0xff]  ;;  %99 = vperm.xlu0 %811, %v73_v29   ;;  %472 = vmatprep.mubr.f32.mxu1 %v846_v8  ;;  %vm516_vm3 = vcmask 261120  }
  0x13   :  { %v54_v34 = vld [vmem:[%s1138_s0 + $0xc8] sm:$0xff]  ;;  %v75_v35 = vld [vmem:[%s1140_s2 + $0x30] sm:$0xff]  ;;  %v756_v36 = vpack.c.bf16 %v36_v32, %v35_v31  ;;  %v76_v37 = vld [vmem:[%s1140_s2 + $0x38] sm:$0xff] }
  0x14   :  { %v759_v38 = vpack.c.bf16 %v54_v34, %v53_v33  ;;  %v371_v39 = vld [vmem:[%s1142_s4] sm:$0xff]  ;;  %v372_v40 = vld [vmem:[%s1142_s4 + $0x8] sm:$0xff]  ;;  %v55_v43 = vld [vmem:[%s1138_s0 + $0xd0] sm:$0xff] }
  0x15   :  { %104 = vperm.xlu1 %812, %v74_v30   ;;  %v37_v41 = vld [vmem:[%s1138_s0 + $0x40] sm:$0xff]  ;;  %v38_v42 = vld [vmem:[%s1138_s0 + $0x48] sm:$0xff]  ;;  %v56_v44 = vld [vmem:[%s1138_s0 + $0xd8] sm:$0xff] }
  0x16   :  { %109 = vperm.xlu0 %811, %v75_v35   ;;  %v373_v45 = vld [vmem:[%s1142_s4 + $0x10] sm:$0xff]  ;;  %v762_v46 = vpack.c.bf16 %v38_v42, %v37_v41  ;;  %v374_v47 = vld [vmem:[%s1142_s4 + $0x18] sm:$0xff]  ;;  %v765_v48 = vpack.c.bf16 %v56_v44, %v55_v43  ;;  %v506_v49 = vld [vmem:[#allocation2] sm:$0x1] }
  0x17   :  { %752 = vmatpush3.bf16.xpose.msk.msra.mxu0 %vm903_vm1, %v750_v26  ;;  %v39_v50 = vld [vmem:[%s1138_s0 + $0x50] sm:$0xff]  ;;  %v40_v51 = vld [vmem:[%s1138_s0 + $0x58] sm:$0xff]  ;;  %v57_v52 = vld [vmem:[%s1138_s0 + $0xe0] sm:$0xff] }
  0x18   :  { %755 = vmatprep.subr.msk.bf16.mxu0 %vm903_vm1, %v753_v28  ;;  %v58_v53 = vld [vmem:[%s1138_s0 + $0xe8] sm:$0xff]  ;;  %v768_v54 = vpack.c.bf16 %v40_v51, %v39_v50  ;;  %v41_v56 = vld [vmem:[%s1138_s0 + $0x60] sm:$0xff]  ;;  %v59_v58 = vld [vmem:[%s1138_s0 + $0xf0] sm:$0xff] }
  0x19   :  { %114 = vperm.xlu1 %812, %v76_v37   ;;  %v771_v55 = vpack.c.bf16 %v58_v53, %v57_v52  ;;  %v42_v57 = vld [vmem:[%s1138_s0 + $0x68] sm:$0xff]  ;;  %v60_v59 = vld [vmem:[%s1138_s0 + $0xf8] sm:$0xff]  ;;  %v43_v62 = vld [vmem:[%s1138_s0 + $0x70] sm:$0xff] }
  0x1a   :  { %377 = vperm.xlu0 %811, %v371_v39   ;;  %v774_v60 = vpack.c.bf16 %v42_v57, %v41_v56  ;;  %v777_v61 = vpack.c.bf16 %v60_v59, %v59_v58  ;;  %v44_v63 = vld [vmem:[%s1138_s0 + $0x78] sm:$0xff]  ;;  %v62_v1 = vld [vmem:[%s1139_s1 + $0x8] sm:$0xff]  ;;  %v63_v2 = vld [vmem:[%s1139_s1 + $0x10] sm:$0xff] }
  0x1b   :  { %v780_v0 = vpack.c.bf16 %v44_v63, %v43_v62  ;;  %v64_v3 = vld [vmem:[%s1139_s1 + $0x18] sm:$0xff]  ;;  %v65_v4 = vld [vmem:[%s1139_s1 + $0x20] sm:$0xff]  ;;  %v66_v5 = vld [vmem:[%s1139_s1 + $0x28] sm:$0xff] }
  0x1c   :  { %v67_v6 = vld [vmem:[%s1139_s1 + $0x30] sm:$0xff]  ;;  %v68_v7 = vld [vmem:[%s1139_s1 + $0x38] sm:$0xff] }
  0x1d   :  { %382 = vperm.xlu1 %812, %v372_v40  }
  0x1e   :  { %387 = vperm.xlu0 %811, %v373_v45  }
  0x1f   :  { %758 = vmatpush3.bf16.xpose.msk.msra.mxu0 %vm903_vm1, %v756_v36 }
  0x20   :  { %761 = vmatprep.subr.msk.bf16.mxu0 %vm903_vm1, %v759_v38 }
  0x21   :  { %392 = vperm.xlu1 %812, %v374_v47  }
  0x22   :  { %509 = vperm.xlu0 %811, %v506_v49  }
  0x27   :  { %764 = vmatpush3.bf16.xpose.msk.msra.mxu0 %vm903_vm1, %v762_v46 }
  0x28   :  { %767 = vmatprep.subr.msk.bf16.mxu0 %vm903_vm1, %v765_v48 }
  0x2f   :  { %770 = vmatpush3.bf16.xpose.msk.msra.mxu0 %vm903_vm1, %v768_v54 }
  0x30   :  { %773 = vmatprep.subr.msk.bf16.mxu0 %vm903_vm1, %v771_v55 }
  0x37   :  { %776 = vmatpush3.bf16.xpose.msk.msra.mxu0 %vm903_vm1, %v774_v60 }
  0x38   :  { %779 = vmatprep.subr.msk.bf16.mxu0 %vm903_vm1, %v777_v61 }
  0x3f   :  { %782 = vmatpush3.bf16.xpose.msk.msra.mxu0 %vm903_vm1, %v780_v0 }
  0x46   :  { %720 = vmatmul.mubr.msk.f32.vlgmr.msra.gmra.mrb[0].mxu0 %vm117_vm0, %v937_v18 }
  0x47   :  { %721 = vmatprep.mubr.msk.f32.mxu0 %vm117_vm0, %v62_v1 }
  0x4a   :  { %722 = vmatmul.mubr.msk.f32.gmra.mrb[2].mxu0 %vm117_vm0, %v62_v1 }
  0x4b   :  { %723 = vmatprep.mubr.msk.f32.mxu0 %vm117_vm0, %v63_v2 }
  0x4e   :  { %724 = vmatmul.mubr.msk.f32.gmra.mrb[4].mxu0 %vm117_vm0, %v63_v2 }
  0x4f   :  { %725 = vmatprep.mubr.msk.f32.mxu0 %vm117_vm0, %v64_v3 }
  0x52   :  { %726 = vmatmul.mubr.msk.f32.gmra.mrb[6].mxu0 %vm117_vm0, %v64_v3 }
  0x53   :  { %727 = vmatprep.mubr.msk.f32.mxu0 %vm117_vm0, %v65_v4 }
  0x56   :  { %728 = vmatmul.mubr.msk.f32.gmra.mrb[8].mxu0 %vm117_vm0, %v65_v4 }
  0x57   :  { %729 = vmatprep.mubr.msk.f32.mxu0 %vm117_vm0, %v66_v5 }
  0x5a   :  { %730 = vmatmul.mubr.msk.f32.gmra.mrb[10].mxu0 %vm117_vm0, %v66_v5 }
  0x5b   :  { %731 = vmatprep.mubr.msk.f32.mxu0 %vm117_vm0, %v67_v6 }
  0x5e   :  { %732 = vmatmul.mubr.msk.f32.gmra.mrb[12].mxu0 %vm117_vm0, %v67_v6 }
  0x5f   :  { %733 = vmatprep.mubr.msk.f32.mxu0 %vm117_vm0, %v68_v7 }
  0x62   :  { %734 = vmatmul.mubr.msk.f32.gmra.mrb[14].mxu0 %vm117_vm0, %v68_v7 }
  0x88   :  { %v80_v9 = vpop.permute.xlu0 %79  ;;  %v90_v18 = vpop.permute.xlu1 %89 }
  0x8c   :  { %v85_v13 = vpop.permute.xlu0 %84 }
  0x90   :  { %v95_v29 = vpop.permute.xlu1 %94 }
  0x91   :  { %v100_v42 = vpop.permute.xlu0 %99 }
  0x94   :  { %v105_v45 = vpop.permute.xlu1 %104 }
  0x95   :  { %v110_v58 = vpop.permute.xlu0 %109 }
  0x98   :  { %v115_v61 = vpop.permute.xlu1 %114 }
 0x119   :  { %v304_v10 = vpop.f32.mrb[0].mxu0 }
 0x11a   :  { %v306_v11 = vpop.f32.mrb[1].mxu0  ;;  %v305_v12 = vadd.f32 %v304_v10, %v80_v9  ;;  %v367_v10 = vld [vmem:[%s1141_s3] sm:$0xff] }
 0x11b   :  { %v307_v14 = vadd.f32 %v306_v11, %v80_v9  ;;  %v368_v11 = vld [vmem:[%s1141_s3 + $0x8] sm:$0xff] }
 0x11c   :  { %v351_v20 = vmax.f32 %v305_v12, 0.0  ;;  %v369_v12 = vld [vmem:[%s1141_s3 + $0x10] sm:$0xff] }
 0x11d   :  { %v310_v15 = vpop.f32.mrb[2].mxu0  ;;  %v352_v22 = vmax.f32 %v307_v14, 0.0 }
 0x11e   :  { %v311_v16 = vadd.f32 %v310_v15, %v85_v13  ;;  %v312_v17 = vpop.f32.mrb[3].mxu0 }
 0x11f   :  { %v313_v19 = vadd.f32 %v312_v17, %v85_v13  ;;  %v370_v13 = vld [vmem:[%s1141_s3 + $0x18] sm:$0xff] }
 0x120   :  { %v353_v21 = vmax.f32 %v311_v16, 0.0  ;;  %v378_v16 = vpop.permute.xlu0 %377 }
 0x121   :  { %v354_v23 = vmax.f32 %v313_v19, 0.0  ;;  %v316_v24 = vpop.f32.mrb[4].mxu0 }
 0x122   :  { %v318_v25 = vpop.f32.mrb[5].mxu0  ;;  %v785_v26 = vpack.c.bf16 %v353_v21, %v351_v20  ;;  %v317_v28 = vadd.f32 %v316_v24, %v90_v18 }
 0x123   :  { %v783_v27 = vpack.c.bf16 %v354_v23, %v352_v22  ;;  %v319_v30 = vadd.f32 %v318_v25, %v90_v18  ;;  %v383_v18 = vpop.permute.xlu1 %382 }
 0x124   :  { %v355_v35 = vmax.f32 %v317_v28, 0.0 }
 0x125   :  { %v322_v31 = vpop.f32.mrb[6].mxu0  ;;  %784 = vmatprep.subr.bf16.mxu1 %v783_v27  ;;  %v356_v37 = vmax.f32 %v319_v30, 0.0 }
 0x126   :  { %v323_v32 = vadd.f32 %v322_v31, %v95_v29  ;;  %v324_v33 = vpop.f32.mrb[7].mxu0  ;;  %786 = vmatpush1.bf16.msra.mxu1 %v785_v26  ;;  %v388_v31 = vpop.permute.xlu0 %387 }
 0x127   :  { %v325_v34 = vadd.f32 %v324_v33, %v95_v29  ;;  %v393_v33 = vpop.permute.xlu1 %392 }
 0x128   :  { %v357_v36 = vmax.f32 %v323_v32, 0.0 }
 0x129   :  { %v358_v38 = vmax.f32 %v325_v34, 0.0  ;;  %v328_v39 = vpop.f32.mrb[8].mxu0 }
 0x12a   :  { %v789_v40 = vpack.c.bf16 %v357_v36, %v355_v35  ;;  %v330_v41 = vpop.f32.mrb[9].mxu0  ;;  %v329_v44 = vadd.f32 %v328_v39, %v100_v42 }
 0x12b   :  { %v787_v43 = vpack.c.bf16 %v358_v38, %v356_v37  ;;  %v331_v46 = vadd.f32 %v330_v41, %v100_v42 }
 0x12c   :  { %v359_v51 = vmax.f32 %v329_v44, 0.0 }
 0x12d   :  { %v334_v47 = vpop.f32.mrb[10].mxu0  ;;  %788 = vmatprep.subr.bf16.mxu1 %v787_v43  ;;  %v360_v53 = vmax.f32 %v331_v46, 0.0  ;;  %v512_v46 = vlaneseq }
 0x12e   :  { %v335_v48 = vadd.f32 %v334_v47, %v105_v45  ;;  %v336_v49 = vpop.f32.mrb[11].mxu0  ;;  %790 = vmatpush1.bf16.msra.mxu1 %v789_v40 }
 0x12f   :  { %v337_v50 = vadd.f32 %v336_v49, %v105_v45  ;;  %v505_v45 = vld [vmem:[%s1143_s5] sm:$0x1]  ;;  %v513_v47 = vshrl.u32 %v512_v46, 7  ;;  %v510_v49 = vpop.permute.xlu0 %509  ;;  %s848_s5 = smov [#allocation3]   ;;  %vm623_vm4 = vcmp.lt.s32.totalorder %v512_v46, 256 }
 0x130   :  { %v361_v52 = vmax.f32 %v335_v48, 0.0  ;;  %s632_s13 = sshll.u32 %s848_s5, 4  ;;  %s633_s13 = int_to_ptr.vmem [resolvable:$true] %s632_s13 }
 0x131   :  { %v362_v54 = vmax.f32 %v337_v50, 0.0  ;;  %v340_v55 = vpop.f32.mrb[12].mxu0  ;;  %v514_v48 = vsub.s32 0, %v513_v47  ;;  %s821_s2 = scalar_lea.vmem %s633_s13, 32  ;;  %p826_p1 = scmp.lt.s32.totalorder %s633_s13, %s633_s13 }
 0x132   :  { %v793_v56 = vpack.c.bf16 %v361_v52, %v359_v51  ;;  %v342_v57 = vpop.f32.mrb[13].mxu0  ;;  %v341_v60 = vadd.f32 %v340_v55, %v110_v58  ;;  %p822_p0 = scmp.ne.s32.totalorder %s633_s13, %s821_s2  ;;  %p827_p2 = scmp.lt.s32.totalorder %s821_s2, %s821_s2 }
 0x133   :  { %v791_v59 = vpack.c.bf16 %v362_v54, %v360_v53  ;;  %v343_v62 = vadd.f32 %v342_v57, %v110_v58  ;;  %v515_v50 = vrot.slane %v510_v49, %v514_v48 }
 0x134   :  { %v363_v3 = vmax.f32 %v341_v60, 0.0  ;;  %p828_p3 = por %p827_p2, %p826_p1 }
 0x135   :  { %v346_v63 = vpop.f32.mrb[14].mxu0  ;;  %792 = vmatprep.subr.bf16.mxu1 %v791_v59  ;;  %v364_v5 = vmax.f32 %v343_v62, 0.0 }
 0x136   :  { %v347_v0 = vadd.f32 %v346_v63, %v115_v61  ;;  %v348_v1 = vpop.f32.mrb[15].mxu0  ;;  %794 = vmatpush1.bf16.msra.mxu1 %v793_v56  ;;  %p829_p4 = pnand %p828_p3, %p822_p0 }
 0x137   :  { %v349_v2 = vadd.f32 %v348_v1, %v115_v61  ;;  %v847_v61 = vmov 1966171168  }
 0x138   :  { %v365_v4 = vmax.f32 %v347_v0, 0.0  ;;  %v607_v62 = vunpack.c.l.s4 %v847_v61 }
 0x139   :  { %v366_v6 = vmax.f32 %v349_v2, 0.0 }
 0x13a   :  { %v797_v7 = vpack.c.bf16 %v365_v4, %v363_v3  ;;  %v608_v63 = vunpack.c.0.s8 %v607_v62 }
 0x13b   :  { %v795_v9 = vpack.c.bf16 %v366_v6, %v364_v5 }
 0x13c   :  { %v611_v1 = vsub.s32 %v608_v63, %v513_v47 }
 0x13d   :  { %796 = vmatprep.subr.bf16.mxu1 %v795_v9 }
 0x13e   :  { %798 = vmatpush1.bf16.msra.mxu1 %v797_v7 }
 0x141   :  { %680 = vmatmul.mubr.msk.f32.vlgmr.msra.gmra.mrb[0].mxu1 %vm395_vm2, %v367_v10 }
 0x142   :  { %478 = vmatprep.mubr.f32.mxu1 %v846_v8 }
 0x145   :  { %681 = vmatmul.mubr.msk.f32.gmra.mrb[2].mxu1 %vm395_vm2, %v368_v11 }
 0x146   :  { %484 = vmatprep.mubr.f32.mxu1 %v846_v8 }
 0x149   :  { %682 = vmatmul.mubr.msk.f32.gmra.mrb[4].mxu1 %vm395_vm2, %v369_v12 }
 0x14a   :  { %490 = vmatprep.mubr.f32.mxu1 %v846_v8 }
 0x14d   :  { %683 = vmatmul.mubr.msk.f32.gmra.mrb[6].mxu1 %vm395_vm2, %v370_v13 }
 0x14e   :  { %584 = vmatprep.mubr.f32.mxu1 %v846_v8 }
 0x214   :  { %v474_v14 = vpop.f32.mrb[0].mxu1 }
 0x215   :  { %v476_v15 = vpop.f32.mrb[1].mxu1  ;;  %v475_v17 = vadd.f32 %v474_v14, %v378_v16 }
 0x216   :  { %v477_v19 = vadd.f32 %v476_v15, %v378_v16 }
 0x217   :  { %v497_v24 = vmax.f32 %v475_v17, 0.0 }
 0x218   :  { %v480_v20 = vpop.f32.mrb[2].mxu1  ;;  %v498_v26 = vmax.f32 %v477_v19, 0.0 }
 0x219   :  { %v481_v21 = vadd.f32 %v480_v20, %v383_v18  ;;  %v482_v22 = vpop.f32.mrb[3].mxu1 }
 0x21a   :  { %v483_v23 = vadd.f32 %v482_v22, %v383_v18 }
 0x21b   :  { %v499_v25 = vmax.f32 %v481_v21, 0.0 }
 0x21c   :  { %v500_v27 = vmax.f32 %v483_v23, 0.0  ;;  %v486_v28 = vpop.f32.mrb[4].mxu1 }
 0x21d   :  { %v801_v29 = vpack.c.bf16 %v499_v25, %v497_v24  ;;  %v488_v30 = vpop.f32.mrb[5].mxu1  ;;  %v487_v8 = vadd.f32 %v486_v28, %v388_v31 }
 0x21e   :  { %v799_v32 = vpack.c.bf16 %v500_v27, %v498_v26  ;;  %v489_v34 = vadd.f32 %v488_v30, %v388_v31 }
 0x21f   :  { %v501_v39 = vmax.f32 %v487_v8, 0.0 }
 0x220   :  { %v492_v35 = vpop.f32.mrb[6].mxu1  ;;  %800 = vmatprep.subr.bf16.mxu1 %v799_v32  ;;  %v502_v41 = vmax.f32 %v489_v34, 0.0 }
 0x221   :  { %v493_v36 = vadd.f32 %v492_v35, %v393_v33  ;;  %v494_v37 = vpop.f32.mrb[7].mxu1  ;;  %802 = vmatpush1.bf16.msra.mxu1 %v801_v29 }
 0x222   :  { %v495_v38 = vadd.f32 %v494_v37, %v393_v33 }
 0x223   :  { %v503_v40 = vmax.f32 %v493_v36, 0.0 }
 0x224   :  { %v504_v42 = vmax.f32 %v495_v38, 0.0 }
 0x225   :  { %v805_v43 = vpack.c.bf16 %v503_v40, %v501_v39 }
 0x226   :  { %v803_v44 = vpack.c.bf16 %v504_v42, %v502_v41 }
 0x228   :  { %804 = vmatprep.subr.bf16.mxu1 %v803_v44 }
 0x229   :  { %806 = vmatpush1.bf16.msra.mxu1 %v805_v43 }
 0x22c   :  { %684 = vmatmul.mubr.msk.f32.vlgmr.msra.gmra.mrb[8].mxu1 %vm516_vm3, %v505_v45 }
 0x2ff   :  { %v586_v51 = vpop.f32.mrb[8].mxu1 }
 0x300   :  { %v587_v52 = vadd.f32 %v586_v51, %v515_v50  ;;  %v588_v53 = vpop.f32.mrb[9].mxu1 }
 0x301   :  { %v589_v54 = vadd.f32 %v588_v53, %v515_v50 }
 0x302   :  { %v685_v55 = vmul.f32 -1.442695, %v587_v52 }
 0x303   :  { %v686_v56 = vmul.f32 -1.442695, %v589_v54 }
 0x304   :  { %813 = vpow2.f32 %v685_v55 }
 0x305   :  { %815 = vpow2.f32 %v686_v56 }
 0x30e   :  { %v814_v57 = vpop.eup %813 }
 0x30f   :  { %v816_v58 = vpop.eup %815  ;;  %v597_v59 = vadd.f32 1.0, %v814_v57 }
 0x310   :  { %v598_v60 = vadd.f32 1.0, %v816_v58 }
 0x311   :  { %817 = vrcp.f32 %v597_v59 }
 0x312   :  { %819 = vrcp.f32 %v598_v60 }
 0x31b   :  { %v818_v0 = vpop.eup %817 }
 0x31c   :  { %v820_v2 = vpop.eup %819 }
 0x31d   :  { %v605_v3 = vcombine.low %v818_v0, %v820_v2 }
 0x31f   :  { %v612_v4 = vrot.slane %v605_v3, %v611_v1 }
 0x321   :  { %v619_v5 = vrot.slane %v612_v4, %v611_v1 }
 0x323   :  { %625 = vst.msk [vmem:[#allocation3] sm:$0x3] %vm623_vm4, %v619_v5 }
 0x324   :  { %832 = shalt.err (!%p829_p4)
}
 0x325   :  { %s833_s16 = scalar_lea.hbm %s1145_s7, 32 }
 0x326   :  { %p834_p5 = scmp.ne.s32.totalorder %s1145_s7, %s833_s16  ;;  %p837_p6 = scmp.lt.u32.totalorder %s833_s16, %s1145_s7 }
 0x328   :  { %p839_p7 = pnand %p837_p6, %p834_p5 }
 0x32a   :  { %842 = shalt.err (!%p839_p7)
}
 0x32b   :  { %635 = dma.vmem_to_hbm [thread:$0]  %s633_s13, 32, %s1145_s7, [#allocation4]  }
 0x32c   :  { %843 = dma.done.wait [#allocation4], 32  }
 0x32d   :  { %844 = vsyncadd [#allocation4], 4294967264 }
 0x32e   :  { %639 = vsyncpa [#allocation4], 1 }

</bundles_post_ra>
